<compile_context>
chip_gen: v6e
topology: v6e:2x2x1
jax: 0.10.0
libtpu: 0.0.40
codegen_flags: <defaults>
</compile_context>

<pallas_src>
import math

import jax
import jax.numpy as jnp
from jax.experimental import pallas as pl
from jax.experimental.pallas import tpu as pltpu


def _gamma_kernel(x_ref, w_ref, o_ref):
    # x_ref: (TB, D) VMEM tile, w_ref: (1, D) resident weight, o_ref: (TB, 1).
    x = x_ref[...].astype(jnp.float32)              # (TB, D)
    w = w_ref[...].astype(jnp.float32)              # (1, D)
    # Linear with no bias: y = x @ w.T  -> (TB, 1), done as broadcast-mul +
    # lane reduction (VPU + XLU; avoids a degenerate N=1 MXU matmul).
    y = jnp.sum(x * w, axis=-1, keepdims=True)      # (TB, 1) float32
    o_ref[...] = y.astype(o_ref.dtype)


def _round_up(n, m):
    return ((n + m - 1) // m) * m


def _choose_block_rows(B, D, itemsize, budget_bytes=16 << 20):
    """Pick a batch tile size: multiple of 8, capped so the double-buffered
    x tile fits comfortably inside the scoped VMEM limit on every generation
    (v7x has only ~32 MiB scoped / 64 MiB physical)."""
    max_rows = max(8, budget_bytes // (2 * D * itemsize))
    tb = min(512, max_rows)
    tb = max(8, (tb // 8) * 8)
    # Never larger than the (sublane-rounded) batch itself.
    tb = min(tb, _round_up(B, 8))
    return tb


def gamma_network_forward(x, weight):
    """x: (B, D), weight: (1, D) -> (B,) ; same semantics as
    torch.nn.Linear(D, 1, bias=False)(x).squeeze(-1)."""
    B, D = x.shape
    out_dtype = x.dtype
    itemsize = jnp.dtype(x.dtype).itemsize

    TB = _choose_block_rows(B, D, itemsize)
    B_pad = _round_up(B, TB)
    if B_pad != B:
        x = jnp.pad(x, ((0, B_pad - B), (0, 0)))
    grid = (B_pad // TB,)

    cost = pl.CostEstimate(
        flops=2 * B_pad * D,
        transcendentals=0,
        bytes_accessed=itemsize * (B_pad * D + D + B_pad),
    )

    out2d = pl.pallas_call(
        _gamma_kernel,
        out_shape=jax.ShapeDtypeStruct((B_pad, 1), out_dtype),
        grid_spec=pltpu.PrefetchScalarGridSpec(
            num_scalar_prefetch=0,
            grid=grid,
            in_specs=[
                pl.BlockSpec((TB, D), lambda i: (i, 0)),   # stream batch tiles
                pl.BlockSpec((1, D), lambda i: (0, 0)),    # weight stays resident
            ],
            out_specs=pl.BlockSpec((TB, 1), lambda i: (i, 0)),
        ),
        compiler_params=pltpu.CompilerParams(
            dimension_semantics=("parallel",)),
        cost_estimate=cost,
    )(x, weight)

    return out2d[:B, 0]   # drop pad rows + squeeze(-1)


def init_gamma_weight(key, theta_dim):
    # torch.nn.init.xavier_normal_ on weight of shape (1, theta_dim), gain=1.0:
    # std = gain * sqrt(2 / (fan_in + fan_out)) = sqrt(2 / (theta_dim + 1))
    std = math.sqrt(2.0 / (theta_dim + 1))
    return std * jax.random.normal(key, (1, theta_dim), dtype=jnp.float32)


if __name__ == "__main__":
    key = jax.random.PRNGKey(0)
    k_x, k_w, k_x2 = jax.random.split(key, 3)

    theta_dim = 32
    w = init_gamma_weight(k_w, theta_dim)

    # Small shape matching the module spec.
    B = 8
    x = jax.random.normal(k_x, (B, theta_dim), dtype=jnp.float32)
    out = jax.block_until_ready(gamma_network_forward(x, w))
    ref = (x @ w.T)[:, 0]
    assert out.shape == (B,)
    assert jnp.allclose(out, ref, atol=1e-5, rtol=1e-5)

    # Exercise the batch-padding / tiling path (B not a multiple of 8).
    B2 = 100
    x2 = jax.random.normal(k_x2, (B2, theta_dim), dtype=jnp.float32)
    out2 = jax.block_until_ready(gamma_network_forward(x2, w))
    ref2 = (x2 @ w.T)[:, 0]
    assert out2.shape == (B2,)
    assert jnp.allclose(out2, ref2, atol=1e-5, rtol=1e-5)

    print("KERNEL_OK")
</pallas_src>

<mosaic_0001>
module attributes {stable_mosaic.version = 11 : i64} {
  func.func @_gamma_kernel(%arg0: i32, %arg1: memref<8x32xf32, #tpu.memory_space<vmem>>, %arg2: memref<1x32xf32, #tpu.memory_space<vmem>>, %arg3: memref<8x1xf32, #tpu.memory_space<vmem>>) attributes {dimension_semantics = [#tpu.dimension_semantics<parallel>], iteration_bounds = array<i64: 1>, scalar_prefetch = 0 : i64, scratch_operands = 0 : i64, tpu.core_type = #tpu.core_type<tc>, window_params = [{transform_indices = @transform_0, window_bounds = array<i64: 8, 32>}, {pipeline_mode = #tpu.pipeline_mode<synchronous>, transform_indices = @transform_1, window_bounds = array<i64: 1, 32>}, {transform_indices = @transform_2, window_bounds = array<i64: 8, 1>}]} {
    %c0 = arith.constant 0 : index
    %c0_0 = arith.constant 0 : index
    %0 = vector.load %arg1[%c0, %c0_0] : memref<8x32xf32, #tpu.memory_space<vmem>>, vector<8x32xf32>
    %c0_1 = arith.constant 0 : index
    %c0_2 = arith.constant 0 : index
    %1 = vector.load %arg2[%c0_1, %c0_2] : memref<1x32xf32, #tpu.memory_space<vmem>>, vector<1x32xf32>
    %2 = vector.broadcast %1 : vector<1x32xf32> to vector<8x32xf32>
    %3 = arith.mulf %0, %2 : vector<8x32xf32>
    %cst = arith.constant dense<0.000000e+00> : vector<8xf32>
    %4 = vector.multi_reduction <add>, %3, %cst [1] : vector<8x32xf32> to vector<8xf32>
    %5 = vector.shape_cast %4 : vector<8xf32> to vector<8x1xf32>
    %c0_3 = arith.constant 0 : index
    %c0_4 = arith.constant 0 : index
    %6 = vector.load %arg3[%c0_3, %c0_4] : memref<8x1xf32, #tpu.memory_space<vmem>>, vector<8x1xf32>
    tpu.vector_store %arg3[%c0_3, %c0_4], %5 {strides = array<i32>} : memref<8x1xf32, #tpu.memory_space<vmem>>, vector<8x1xf32>,
    return
  }
  func.func @transform_0(%arg0: i32) -> (i32, i32) {
    %c0_i32 = arith.constant 0 : i32
    %c0_i32_0 = arith.constant 0 : i32
    return %arg0, %c0_i32 : i32, i32
  }
  func.func @transform_1(%arg0: i32) -> (i32, i32) {
    %c0_i32 = arith.constant 0 : i32
    %c0_i32_0 = arith.constant 0 : i32
    %c0_i32_1 = arith.constant 0 : i32
    return %c0_i32, %c0_i32_0 : i32, i32
  }
  func.func @transform_2(%arg0: i32) -> (i32, i32) {
    %c0_i32 = arith.constant 0 : i32
    %c0_i32_0 = arith.constant 0 : i32
    return %arg0, %c0_i32 : i32, i32
  }
}

</mosaic_0001>

<bundles_post_ra>
// kernel: tpu_custom_call.1
= control target key start
LH: loop header
LB: loop body
LE: loop exit
PB: predicated region body
PF: predicated region fallthrough
CT: control target
= control target key end

     0   :  { %7 = vsyncpa [#allocation3], 0  ;;  %s67_s9 = smov [#allocation2]   ;;  %s92_s0 = inlined_call_operand.hbm [shape: f32[8,32], index: 0, kind: input, shape index: {}]   ;;  %s93_s1 = inlined_call_operand.vmem [shape: f32[1,32], index: 1, kind: input, shape index: {}]   ;;  %s94_s2 = inlined_call_operand.vmem [shape: f32[8,1], index: 2, kind: output, shape index: {}]  }
   0x1   :  { %s14_s10 = sshll.u32 %s67_s9, 4  ;;  %s15_s10 = int_to_ptr.vmem [resolvable:$true] %s14_s10 }
   0x2   :  { %s53_s11 = scalar_lea.vmem %s15_s10, 128  ;;  %p58_p1 = scmp.lt.s32.totalorder %s15_s10, %s15_s10 }
   0x3   :  { %p54_p0 = scmp.ne.s32.totalorder %s15_s10, %s53_s11  ;;  %p59_p2 = scmp.lt.s32.totalorder %s53_s11, %s53_s11 }
   0x5   :  { %p60_p3 = por %p59_p2, %p58_p1 }
   0x7   :  { %p61_p4 = pnand %p60_p3, %p54_p0 }
   0x9   :  { %64 = shalt.err (!%p61_p4)
}
   0xa   :  { %17 = dma.hbm_to_vmem [thread:$0]  %s92_s0, 128, %s15_s10, [#allocation3]  }
   0xb   :  { %65 = dma.done.wait [#allocation3], 128  }
   0xc   :  { %66 = vsyncadd [#allocation3], 4294967168  ;;  %v23_v0 = vld [vmem:[#allocation2] sm:$0xff]  ;;  %vm32_vm0 = vcmask 261120   ;;  %vm36_vm1 = vcmask 7168  }
   0xd   :  { %v43_v1 = vld [vmem:[%s93_s1] ss:$0 sm:$0xff] }
   0xe   :  { %v31_v2 = vmul.f32 %v43_v1, %v23_v0 }
  0x10   :  { %v33_v3 = vsel %vm32_vm0, %v31_v2, 0.0 }
  0x11   :  { %34 = vadd.xlane.f32.xlu0 %v33_v3 }
  0x9a   :  { %v35_v4 = vpop.xlane.xlu0 %34 }
  0x9b   :  { %37 = vst.msk [vmem:[%s94_s2] sm:$0xff] %vm36_vm1, %v35_v4 }
  0x9c   :  { %42 = vsyncpa [#allocation3], 1 }

</bundles_post_ra>
